<compile_context>
chip_gen: v7x
topology: tpu7x:2x2x1
jax: 0.10.0
libtpu: 0.0.40
codegen_flags: <defaults>
</compile_context>

<pallas_src>
import functools

import jax
import jax.numpy as jnp
from jax.experimental import pallas as pl
from jax.experimental.pallas import tpu as pltpu


NCH = 16                       # RDB base channel count
NLAYER = 4                     # dense layers per RDB
GROWTH = 16                    # growth rate
WIDE = NCH + NLAYER * GROWTH   # 80 channels after the dense concat
CIN = 3                        # channels of each of the two network inputs


# ----------------------------------------------------------------------------
# pltpu.roll direction probe (one tiny kernel, run once, cached).
# The conv needs shifted[:, p] == x[:, (p + d) % HW].  With jnp.roll-like
# semantics that is shift = -d; probing makes the fused kernel robust to
# either rotation convention.
# ----------------------------------------------------------------------------
@functools.lru_cache(maxsize=None)
def _roll_is_jnp_like():
    def probe(x_ref, o_ref):
        o_ref[...] = pltpu.roll(x_ref[...], shift=1, axis=1)

    x = jnp.tile(jnp.arange(256, dtype=jnp.float32)[None, :], (8, 1))
    y = pl.pallas_call(
        probe, out_shape=jax.ShapeDtypeStruct((8, 256), jnp.float32))(x)
    return bool(y[0, 0] == 255.0)   # last element rotated to index 0


# ----------------------------------------------------------------------------
# Fused forward kernel (one batch element per grid step).
# ----------------------------------------------------------------------------
def _make_fused_kernel(H, W, roll_is_jnp_like):
    HW = H * W
    taps = [(dy, dx) for dy in (-1, 0, 1) for dx in (-1, 0, 1)]
    f32 = jnp.float32

    def kernel(x_ref, y_ref, w01_ref, b01_ref, wd_ref, wf_ref,
               wb1_ref, wb2_ref, o_ref, slab_ref):
        # Boundary masks (one (1, HW) mask per tap): zero the contributions
        # whose source pixel falls outside the image ("same" zero padding).
        pos = jax.lax.broadcasted_iota(jnp.int32, (1, HW), 1)
        hh = pos // W
        ww = pos % W
        masks = []
        for dy, dx in taps:
            m = ((hh + dy >= 0) & (hh + dy < H) &
                 (ww + dx >= 0) & (ww + dx < W))
            masks.append(m.astype(f32))

        def shift_src(x, d):
            # shifted[:, p] = x[:, (p + d) % HW]   (lane rotate on the XLU)
            if d == 0:
                return x
            amt = (-d) % HW if roll_is_jnp_like else d % HW
            return pltpu.roll(x, shift=amt, axis=1)

        def conv3x3(x, w_taps, bias=None, relu=False):
            # x: (Cin, HW), w_taps[t]: (Cout, Cin)  ->  (Cout, HW)
            acc = None
            for t, (dy, dx) in enumerate(taps):
                d = dy * W + dx
                part = jnp.dot(w_taps[t], shift_src(x, d),
                               preferred_element_type=f32)
                if d != 0:
                    part = part * masks[t]      # mask the cheaper Cout side
                acc = part if acc is None else acc + part
            if bias is not None:
                acc = acc + bias
            if relu:
                acc = jnp.maximum(acc, 0.0)
            return acc

        def tap_list(ref3d, base):
            return [ref3d[base + t] for t in range(9)]

        # conv01: Conv2d(6, 16, 3, 1, 1) with bias (no ReLU).  The channel
        # concat of (x, y) is folded into two weight groups so no HBM / VMEM
        # concatenation is needed.
        h = conv3x3(x_ref[...], tap_list(w01_ref, 0), bias=b01_ref[...])
        h = h + conv3x3(y_ref[...], tap_list(w01_ref, 9))

        # Two residual dense blocks.  The channel concat lives in the VMEM
        # slab; not-yet-written slab rows are zero and the corresponding
        # weight columns are zero-padded, so every dense layer contracts over
        # the full 80-channel slab.
        for r in range(2):
            slab_ref[...] = jnp.zeros((WIDE, HW), f32)
            slab_ref[0:NCH, :] = h
            for i in range(NLAYER):
                base = (r * NLAYER + i) * 9
                d_out = conv3x3(slab_ref[...], tap_list(wd_ref, base),
                                relu=True)                     # (16, HW)
                lo = NCH + i * GROWTH
                slab_ref[lo:lo + GROWTH, :] = d_out
            fused = jnp.dot(wf_ref[r], slab_ref[...],
                            preferred_element_type=f32)        # 1x1 fuse
            h = fused + h                                      # local residual

        # BasicBlocks: bias-free conv3x3 + ReLU.
        h = conv3x3(h, tap_list(wb1_ref, 0), relu=True)        # 16 -> 16
        h = conv3x3(h, tap_list(wb2_ref, 0), relu=True)        # 16 -> 3
        o_ref[...] = h.astype(o_ref.dtype)

    return kernel


@functools.lru_cache(maxsize=None)
def _build_forward(N, C, H, W, roll_is_jnp_like):
    assert C == CIN
    HW = H * W
    kernel = _make_fused_kernel(H, W, roll_is_jnp_like)

    pallas_fn = pl.pallas_call(
        kernel,
        out_shape=jax.ShapeDtypeStruct((N, 3, HW), jnp.float32),
        grid=(N,),
        in_specs=[
            pl.BlockSpec((None, C, HW), lambda n: (n, 0, 0)),          # x
            pl.BlockSpec((None, C, HW), lambda n: (n, 0, 0)),          # y
            pl.BlockSpec((2 * 9, NCH, C), lambda n: (0, 0, 0)),        # w01 taps
            pl.BlockSpec((NCH, 1), lambda n: (0, 0)),                  # b01
            pl.BlockSpec((2 * NLAYER * 9, NCH, WIDE),
                         lambda n: (0, 0, 0)),                         # dense taps
            pl.BlockSpec((2, NCH, WIDE), lambda n: (0, 0, 0)),         # 1x1 fuse
            pl.BlockSpec((9, NCH, NCH), lambda n: (0, 0, 0)),          # bb1 taps
            pl.BlockSpec((9, 3, NCH), lambda n: (0, 0, 0)),            # bb2 taps
        ],
        out_specs=pl.BlockSpec((None, 3, HW), lambda n: (n, 0, 0)),
        scratch_shapes=[pltpu.VMEM((WIDE, HW), jnp.float32)],
        compiler_params=pltpu.CompilerParams(
            dimension_semantics=("parallel",)),
    )

    @jax.jit
    def fwd(kparams, x_nchw, y_nchw):
        x2 = x_nchw.reshape(N, C, HW).astype(jnp.float32)
        y2 = y_nchw.reshape(N, C, HW).astype(jnp.float32)
        out = pallas_fn(x2, y2, kparams["w01"], kparams["b01"],
                        kparams["wd"], kparams["wf"],
                        kparams["wb1"], kparams["wb2"])
        return out.reshape(N, 3, H, W)

    return fwd


def second_net_forward(kparams, x_nchw, y_nchw):
    N, C, H, W = x_nchw.shape
    return _build_forward(N, C, H, W, _roll_is_jnp_like())(
        kparams, x_nchw, y_nchw)


# ----------------------------------------------------------------------------
# Parameter init (deterministic, PyTorch-style kaiming-uniform bounds) in the
# natural (KH, KW, Cin, Cout) layout, plus a prep step that reshapes /
# transposes / zero-pads them into the kernel's per-tap layout.
# ----------------------------------------------------------------------------
def _init_conv(key, kh, kw, cin, cout, bias):
    kw_key, kb_key = jax.random.split(key)
    fan_in = cin * kh * kw
    bound = 1.0 / (fan_in ** 0.5)
    w = jax.random.uniform(kw_key, (kh, kw, cin, cout), jnp.float32,
                           -bound, bound)
    b = (jax.random.uniform(kb_key, (cout,), jnp.float32, -bound, bound)
         if bias else None)
    return w, b


def init_second_net_params(key):
    keys = iter(jax.random.split(key, 16))
    params = {}
    params["conv01_w"], params["conv01_b"] = _init_conv(
        next(keys), 3, 3, 2 * CIN, NCH, True)

    def init_rdb():
        dense_ws = []
        c = NCH
        for _ in range(NLAYER):
            w, _ = _init_conv(next(keys), 3, 3, c, GROWTH, False)
            dense_ws.append(w)
            c += GROWTH
        w1x1, _ = _init_conv(next(keys), 1, 1, c, NCH, False)
        return {"dense_ws": dense_ws, "conv1x1_w": w1x1}

    params["rdb1"] = init_rdb()
    params["rdb2"] = init_rdb()
    params["bb1_w"], _ = _init_conv(next(keys), 3, 3, NCH, NCH, False)
    params["bb2_w"], _ = _init_conv(next(keys), 3, 3, NCH, 3, False)
    return params


def _to_taps(w):
    """(KH, KW, Cin, Cout) -> (KH*KW, Cout, Cin) per-tap matmul weights."""
    kh, kw, cin, cout = w.shape
    return jnp.transpose(w, (0, 1, 3, 2)).reshape(kh * kw, cout, cin)


def prepare_kernel_params(params):
    w01 = _to_taps(params["conv01_w"])                               # (9,16,6)
    w01 = jnp.concatenate([w01[:, :, :CIN], w01[:, :, CIN:]], axis=0)  # (18,16,3)
    b01 = params["conv01_b"].reshape(NCH, 1)

    wd = []
    for r in ("rdb1", "rdb2"):
        for w in params[r]["dense_ws"]:
            t = _to_taps(w)                                          # (9,16,cin)
            t = jnp.pad(t, ((0, 0), (0, 0), (0, WIDE - t.shape[-1])))
            wd.append(t)
    wd = jnp.concatenate(wd, axis=0)                                 # (72,16,80)

    wf = jnp.stack(
        [jnp.transpose(params[r]["conv1x1_w"].reshape(WIDE, NCH), (1, 0))
         for r in ("rdb1", "rdb2")], axis=0)                         # (2,16,80)

    wb1 = _to_taps(params["bb1_w"])                                  # (9,16,16)
    wb2 = _to_taps(params["bb2_w"])                                  # (9,3,16)
    return dict(w01=w01, b01=b01, wd=wd, wf=wf, wb1=wb1, wb2=wb2)


# ----------------------------------------------------------------------------
# Pure-JAX reference (lax.conv) for a correctness check.
# ----------------------------------------------------------------------------
def _conv_ref(x, w, b=None, relu=False):
    out = jax.lax.conv_general_dilated(
        x, jnp.transpose(w, (3, 2, 0, 1)),
        window_strides=(1, 1), padding="SAME",
        dimension_numbers=("NCHW", "OIHW", "NCHW"))
    if b is not None:
        out = out + b.reshape(1, -1, 1, 1)
    if relu:
        out = jnp.maximum(out, 0.0)
    return out


def second_net_ref(params, x, y):
    h = jnp.concatenate([x, y], axis=1)
    h = _conv_ref(h, params["conv01_w"], params["conv01_b"])
    for r in ("rdb1", "rdb2"):
        p = params[r]
        cat = h
        for w in p["dense_ws"]:
            d = _conv_ref(cat, w, relu=True)
            cat = jnp.concatenate([cat, d], axis=1)
        h = _conv_ref(cat, p["conv1x1_w"]) + h
    h = _conv_ref(h, params["bb1_w"], relu=True)
    h = _conv_ref(h, params["bb2_w"], relu=True)
    return h


if __name__ == "__main__":
    key = jax.random.PRNGKey(0)
    kp, kx, ky = jax.random.split(key, 3)

    params = init_second_net_params(kp)
    kparams = prepare_kernel_params(params)

    N, C, H, W = 2, 3, 16, 16
    x = jax.random.normal(kx, (N, C, H, W), jnp.float32)
    y = jax.random.normal(ky, (N, C, H, W), jnp.float32)

    out = jax.block_until_ready(second_net_forward(kparams, x, y))
    assert out.shape == (N, 3, H, W), out.shape
    assert out.dtype == jnp.float32

    ref = jax.block_until_ready(second_net_ref(params, x, y))
    err = float(jnp.max(jnp.abs(out - ref)))
    scale = float(jnp.max(jnp.abs(ref))) + 1e-8
    assert err <= 5e-2 * scale, ("kernel/reference mismatch", err, scale)

    print("KERNEL_OK")
</pallas_src>

<mosaic_0001>
module attributes {stable_mosaic.version = 11 : i64} {
  func.func @probe(%arg0: memref<8x256xf32, #tpu.memory_space<vmem>>, %arg1: memref<8x256xf32, #tpu.memory_space<vmem>>) attributes {dimension_semantics = [], scalar_prefetch = 0 : i64, scratch_operands = 0 : i64, tpu.core_type = #tpu.core_type<tc>} {
    %c0 = arith.constant 0 : index
    %c0_0 = arith.constant 0 : index
    %0 = vector.load %arg0[%c0, %c0_0] : memref<8x256xf32, #tpu.memory_space<vmem>>, vector<8x256xf32>
    %c1_i32 = arith.constant 1 : i32
    %1 = tpu.dynamic_rotate %0 by %c1_i32 dim 1 : vector<8x256xf32>, i32 -> vector<8x256xf32>
    %c0_1 = arith.constant 0 : index
    %c0_2 = arith.constant 0 : index
    %2 = vector.load %arg1[%c0_1, %c0_2] : memref<8x256xf32, #tpu.memory_space<vmem>>, vector<8x256xf32>
    tpu.vector_store %arg1[%c0_1, %c0_2], %1 {strides = array<i32>} : memref<8x256xf32, #tpu.memory_space<vmem>>, vector<8x256xf32>,
    return
  }
}

</mosaic_0001>

<bundles_post_ra>
// kernel: tpu_custom_call.1
= control target key start
LH: loop header
LB: loop body
LE: loop exit
PB: predicated region body
PF: predicated region fallthrough
CT: control target
= control target key end

     0   :  { %6 = vsyncpa [#allocation3], 0  ;;  %s137_s0 = inlined_call_operand.hbm [shape: f32[8,256], index: 0, kind: input, shape index: {}]   ;;  %s138_s1 = inlined_call_operand.hbm [shape: f32[8,256], index: 1, kind: output, shape index: {}]  }
   0x1   :  { %7 = vsyncpa [#allocation4], 0  ;;  %s100_s6 = smov [#allocation2]   ;;  %s52_s10 = scalar_lea.hbm %s137_s0, 256 }
   0x2   :  { %s14_s7 = sshll.u32 %s100_s6, 4  ;;  %p53_p0 = scmp.ne.s32.totalorder %s137_s0, %s52_s10  ;;  %s15_s7 = int_to_ptr.vmem [resolvable:$true] %s14_s7 }
   0x3   :  { %p56_p1 = scmp.lt.u32.totalorder %s52_s10, %s137_s0 }
   0x5   :  { %p58_p2 = pnand %p56_p1, %p53_p0 }
   0x7   :  { %61 = shalt.err (!%p58_p2)
}
   0x8   :  { %s62_s15 = scalar_lea.vmem %s15_s7, 256  ;;  %p67_p4 = scmp.lt.s32.totalorder %s15_s7, %s15_s7 }
   0x9   :  { %p63_p3 = scmp.ne.s32.totalorder %s15_s7, %s62_s15  ;;  %p68_p5 = scmp.lt.s32.totalorder %s62_s15, %s62_s15 }
   0xb   :  { %p69_p6 = por %p68_p5, %p67_p4 }
   0xd   :  { %p70_p7 = pnand %p69_p6, %p63_p3 }
   0xf   :  { %73 = shalt.err (!%p70_p7)
}
  0x10   :  { %17 = dma.hbm_to_vmem [thread:$0]  %s137_s0, 256, %s15_s7, [#allocation3]  }
  0x11   :  { %96 = dma.done.wait [#allocation3], 256  }
  0x12   :  { %97 = vsyncadd [#allocation3], 4294967040  ;;  %v21_v0 = vld [vmem:[#allocation2] sm:$0xff]  ;;  %s101_s18 = smov 1   ;;  %v22_v1 = vld [vmem:[#allocation2 + $0x8] sm:$0xff]  ;;  %v27_v2 = vlaneseq  ;;  %s102_s19 = smov [#allocation5]  }
  0x13   :  { %23 = vrot.lane.b32.xlu0 %v21_v0, %s101_s18  ;;  %s40_s20 = sshll.u32 %s102_s19, 4  ;;  %s41_s20 = int_to_ptr.vmem [resolvable:$true] %s40_s20 }
  0x14   :  { %v28_v3 = vand.u32 127, %v27_v2  ;;  %s74_s0 = scalar_lea.vmem %s41_s20, 256  ;;  %p79_p9 = scmp.lt.s32.totalorder %s41_s20, %s41_s20 }
  0x15   :  { %p75_p8 = scmp.ne.s32.totalorder %s41_s20, %s74_s0  ;;  %p80_p10 = scmp.lt.s32.totalorder %s74_s0, %s74_s0 }
  0x16   :  { %vm29_vm0 = vcmp.lt.s32.totalorder %v28_v3, 1 }
  0x17   :  { %25 = vrot.lane.b32.xlu0 %v22_v1, %s101_s18  ;;  %p81_p11 = por %p80_p10, %p79_p9 }
  0x19   :  { %p82_p12 = pnand %p81_p11, %p75_p8 }
  0x85   :  { %v24_v4 = vpop.permute.xlu0 %23 }
  0x89   :  { %v26_v5 = vpop.permute.xlu0 %25 }
  0x8a   :  { %v30_v6 = vsel %vm29_vm0, %v24_v4, %v26_v5  ;;  %v31_v7 = vsel %vm29_vm0, %v26_v5, %v24_v4 }
  0x8b   :  { %32 = vst [vmem:[#allocation5] sm:$0xff] %v31_v7  ;;  %33 = vst [vmem:[#allocation5 + $0x8] sm:$0xff] %v30_v6 }
  0x8c   :  { %85 = shalt.err (!%p82_p12)
}
  0x8d   :  { %s86_s23 = scalar_lea.hbm %s138_s1, 256 }
  0x8e   :  { %p87_p13 = scmp.ne.s32.totalorder %s138_s1, %s86_s23  ;;  %p90_p0 = scmp.lt.u32.totalorder %s86_s23, %s138_s1 }
  0x90   :  { %p92_p1 = pnand %p90_p0, %p87_p13 }
  0x92   :  { %95 = shalt.err (!%p92_p1)
}
  0x93   :  { %43 = dma.vmem_to_hbm [thread:$0]  %s41_s20, 256, %s138_s1, [#allocation4]  }
  0x94   :  { %98 = dma.done.wait [#allocation4], 256  }
  0x95   :  { %99 = vsyncadd [#allocation4], 4294967040 }
  0x96   :  { %47 = vsyncpa [#allocation3], 1 }
  0x97   :  { %48 = vsyncpa [#allocation4], 1 }

</bundles_post_ra>
